<compile_context>
chip_gen: v7x
topology: tpu7x:2x2x1
jax: 0.10.0
libtpu: 0.0.40
codegen_flags: <defaults>
</compile_context>

<pallas_src>
import jax
import jax.numpy as jnp
import numpy as np
from jax.experimental import pallas as pl
from jax.experimental.pallas import tpu as pltpu


def _channel_mixing8_kernel(q_ref, k_ref, v_ref, o_ref):
    # q_ref/k_ref/v_ref/o_ref: (1, C, T) f32 blocks; pixels on the lane axis.
    q = q_ref[0]                                            # (C, T)
    k = k_ref[0]                                            # (C, T)
    v = v_ref[0]                                            # (C, T)

    # Stable column-wise softmax max:  m[j, p] = max_i v[i, p] * k[j, p]
    vmax = jnp.max(v, axis=0, keepdims=True)                # (1, T)
    vmin = jnp.min(v, axis=0, keepdims=True)                # (1, T)
    m = jnp.where(k >= 0.0, k * vmax, k * vmin)             # (C_j, T)

    # e3[j, i, p] = exp(v[i,p] * k[j,p] - m[j,p])   -- pure VPU/EUP work.
    e3 = jnp.exp(k[:, None, :] * v[None, :, :] - m[:, None, :])   # (C_j, C_i, T)

    # Softmax denominators (reduce over i) and weighted combine with q.
    d = jnp.sum(e3, axis=1)                                 # (C_j, T)
    w = q / d                                               # (C_j, T)
    # out[i, p] = sum_j e3[j, i, p] * q[j, p] / d[j, p]
    o_ref[0] = jnp.sum(e3 * w[:, None, :], axis=0)          # (C_i, T)


def _round_up(n, m):
    return ((n + m - 1) // m) * m


def channel_mixing8(x, y, z):
    """x, y, z: (N, C, H, W) float32.  Returns (N, C, H, W) float32."""
    N, C, H, W = x.shape
    HW = H * W
    itemsize = 4  # float32

    # Lane-dense pixel axis: pad HW up to a multiple of 128.
    hw128 = _round_up(HW, 128)

    # VMEM-aware tile size on the pixel axis (conservative across v5e/v6e/v7x).
    VMEM_BUDGET = 16 * 1024 * 1024
    bytes_per_col = (4 * 2 * C * itemsize        # 4 I/O blocks, double-buffered
                     + 3 * C * C * itemsize)     # (C, C, T) intermediates estimate
    t_cap = max(128, (VMEM_BUDGET // bytes_per_col) // 128 * 128)
    # Hard cap keeps per-step DMAs modest and leaves enough grid steps for the
    # software pipeline / megacore split even when C is tiny.
    T = min(hw128, t_cap, 16384)
    hw_pad = _round_up(hw128, T)
    n_t = hw_pad // T

    def prep(a):
        a = a.reshape(N, C, HW)
        if hw_pad != HW:
            a = jnp.pad(a, ((0, 0), (0, 0), (0, hw_pad - HW)))
        return a

    qf, kf, vf = prep(x), prep(y), prep(z)

    footprint = 4 * 2 * C * T * itemsize + 3 * C * C * T * itemsize
    vmem_limit = int(min(max(footprint * 3 // 2 + (2 << 20), 8 << 20), 32 << 20))

    block = pl.BlockSpec((1, C, T), lambda b, t: (b, 0, t))

    out = pl.pallas_call(
        _channel_mixing8_kernel,
        out_shape=jax.ShapeDtypeStruct((N, C, hw_pad), jnp.float32),
        grid_spec=pltpu.PrefetchScalarGridSpec(
            num_scalar_prefetch=0,
            grid=(N, n_t),
            in_specs=[block, block, block],
            out_specs=block,
        ),
        compiler_params=pltpu.CompilerParams(
            dimension_semantics=("parallel", "parallel"),
            vmem_limit_bytes=vmem_limit,
        ),
    )(qf, kf, vf)

    if hw_pad != HW:
        out = out[:, :, :HW]
    return out.reshape(N, C, H, W)


def _reference(x, y, z):
    # Pure-JAX reference of the PyTorch forward.
    N, C, H, W = x.shape
    q = x.transpose(0, 2, 3, 1).reshape(-1, C)          # (N*H*W, C)
    k = y.transpose(0, 2, 3, 1).reshape(-1, C)
    v = z.transpose(0, 2, 3, 1).reshape(-1, C)
    kv = v[:, :, None] * k[:, None, :]                  # (P, C_i, C_j)
    s = jax.nn.softmax(kv, axis=1)                      # softmax over i
    out = jnp.einsum("pij,pj->pi", s, q)                # (P, C)
    return out.reshape(N, H, W, C).transpose(0, 3, 1, 2)


if __name__ == "__main__":
    key = jax.random.PRNGKey(0)
    N, C, H, W = 2, 4, 16, 16
    kx, ky, kz = jax.random.split(key, 3)
    x = jax.random.normal(kx, (N, C, H, W), dtype=jnp.float32)
    y = jax.random.normal(ky, (N, C, H, W), dtype=jnp.float32)
    z = jax.random.normal(kz, (N, C, H, W), dtype=jnp.float32)

    out = jax.block_until_ready(channel_mixing8(x, y, z))
    ref = jax.block_until_ready(_reference(x, y, z))
    np.testing.assert_allclose(np.asarray(out), np.asarray(ref), rtol=1e-5, atol=1e-5)

    print("KERNEL_OK")
</pallas_src>

<mosaic_0001>
module attributes {stable_mosaic.version = 11 : i64} {
  func.func @_channel_mixing8_kernel(%arg0: i32, %arg1: i32, %arg2: memref<1x4x256xf32, #tpu.memory_space<vmem>>, %arg3: memref<1x4x256xf32, #tpu.memory_space<vmem>>, %arg4: memref<1x4x256xf32, #tpu.memory_space<vmem>>, %arg5: memref<1x4x256xf32, #tpu.memory_space<vmem>>) attributes {dimension_semantics = [#tpu.dimension_semantics<parallel>, #tpu.dimension_semantics<parallel>], iteration_bounds = array<i64: 2, 1>, scalar_prefetch = 0 : i64, scratch_operands = 0 : i64, tpu.core_type = #tpu.core_type<tc>, window_params = [{transform_indices = @transform_0, window_bounds = array<i64: 1, 4, 256>}, {transform_indices = @transform_1, window_bounds = array<i64: 1, 4, 256>}, {transform_indices = @transform_2, window_bounds = array<i64: 1, 4, 256>}, {transform_indices = @transform_3, window_bounds = array<i64: 1, 4, 256>}]} {
    %c0 = arith.constant 0 : index
    %c0_0 = arith.constant 0 : index
    %c0_1 = arith.constant 0 : index
    %0 = vector.load %arg2[%c0, %c0_0, %c0_1] : memref<1x4x256xf32, #tpu.memory_space<vmem>>, vector<1x4x256xf32>
    %1 = vector.shape_cast %0 : vector<1x4x256xf32> to vector<4x256xf32>
    %c0_2 = arith.constant 0 : index
    %c0_3 = arith.constant 0 : index
    %c0_4 = arith.constant 0 : index
    %2 = vector.load %arg3[%c0_2, %c0_3, %c0_4] : memref<1x4x256xf32, #tpu.memory_space<vmem>>, vector<1x4x256xf32>
    %3 = vector.shape_cast %2 : vector<1x4x256xf32> to vector<4x256xf32>
    %c0_5 = arith.constant 0 : index
    %c0_6 = arith.constant 0 : index
    %c0_7 = arith.constant 0 : index
    %4 = vector.load %arg4[%c0_5, %c0_6, %c0_7] : memref<1x4x256xf32, #tpu.memory_space<vmem>>, vector<1x4x256xf32>
    %5 = vector.shape_cast %4 : vector<1x4x256xf32> to vector<4x256xf32>
    %cst = arith.constant dense<0xFF800000> : vector<256xf32>
    %6 = vector.multi_reduction <maximumf>, %5, %cst [0] : vector<4x256xf32> to vector<256xf32>
    %7 = vector.shape_cast %6 : vector<256xf32> to vector<1x256xf32>
    %cst_8 = arith.constant dense<0x7F800000> : vector<256xf32>
    %8 = vector.multi_reduction <minimumf>, %5, %cst_8 [0] : vector<4x256xf32> to vector<256xf32>
    %9 = vector.shape_cast %8 : vector<256xf32> to vector<1x256xf32>
    %cst_9 = arith.constant 0.000000e+00 : f32
    %10 = vector.broadcast %cst_9 : f32 to vector<4x256xf32>
    %11 = arith.cmpf oge, %3, %10 : vector<4x256xf32>
    %12 = vector.broadcast %7 : vector<1x256xf32> to vector<4x256xf32>
    %13 = arith.mulf %3, %12 : vector<4x256xf32>
    %14 = vector.broadcast %9 : vector<1x256xf32> to vector<4x256xf32>
    %15 = arith.mulf %3, %14 : vector<4x256xf32>
    %16 = arith.select %11, %13, %15 : vector<4x256xi1>, vector<4x256xf32>
    %17 = vector.shape_cast %3 : vector<4x256xf32> to vector<4x1x256xf32>
    %18 = vector.shape_cast %5 : vector<4x256xf32> to vector<1x4x256xf32>
    %19 = vector.broadcast %17 : vector<4x1x256xf32> to vector<4x4x256xf32>
    %20 = vector.broadcast %18 : vector<1x4x256xf32> to vector<4x4x256xf32>
    %21 = arith.mulf %19, %20 : vector<4x4x256xf32>
    %22 = vector.shape_cast %16 : vector<4x256xf32> to vector<4x1x256xf32>
    %23 = vector.broadcast %22 : vector<4x1x256xf32> to vector<4x4x256xf32>
    %24 = arith.subf %21, %23 : vector<4x4x256xf32>
    %25 = math.exp %24 : vector<4x4x256xf32>
    %cst_10 = arith.constant dense<0.000000e+00> : vector<4x256xf32>
    %26 = vector.multi_reduction <add>, %25, %cst_10 [1] : vector<4x4x256xf32> to vector<4x256xf32>
    %27 = arith.divf %1, %26 : vector<4x256xf32>
    %28 = vector.shape_cast %27 : vector<4x256xf32> to vector<4x1x256xf32>
    %29 = vector.broadcast %28 : vector<4x1x256xf32> to vector<4x4x256xf32>
    %30 = arith.mulf %25, %29 : vector<4x4x256xf32>
    %cst_11 = arith.constant dense<0.000000e+00> : vector<4x256xf32>
    %31 = vector.multi_reduction <add>, %30, %cst_11 [0] : vector<4x4x256xf32> to vector<4x256xf32>
    %c0_12 = arith.constant 0 : index
    %c0_13 = arith.constant 0 : index
    %c0_14 = arith.constant 0 : index
    %32 = vector.load %arg5[%c0_12, %c0_13, %c0_14] : memref<1x4x256xf32, #tpu.memory_space<vmem>>, vector<1x4x256xf32>
    %33 = vector.shape_cast %32 : vector<1x4x256xf32> to vector<4x256xf32>
    %34 = vector.shape_cast %31 : vector<4x256xf32> to vector<1x4x256xf32>
    tpu.vector_store %arg5[%c0_12, %c0_13, %c0_14], %34 {strides = array<i32>} : memref<1x4x256xf32, #tpu.memory_space<vmem>>, vector<1x4x256xf32>,
    return
  }
  func.func @transform_0(%arg0: i32, %arg1: i32) -> (i32, i32, i32) {
    %c0_i32 = arith.constant 0 : i32
    %c0_i32_0 = arith.constant 0 : i32
    return %arg0, %c0_i32, %arg1 : i32, i32, i32
  }
  func.func @transform_1(%arg0: i32, %arg1: i32) -> (i32, i32, i32) {
    %c0_i32 = arith.constant 0 : i32
    %c0_i32_0 = arith.constant 0 : i32
    return %arg0, %c0_i32, %arg1 : i32, i32, i32
  }
  func.func @transform_2(%arg0: i32, %arg1: i32) -> (i32, i32, i32) {
    %c0_i32 = arith.constant 0 : i32
    %c0_i32_0 = arith.constant 0 : i32
    return %arg0, %c0_i32, %arg1 : i32, i32, i32
  }
  func.func @transform_3(%arg0: i32, %arg1: i32) -> (i32, i32, i32) {
    %c0_i32 = arith.constant 0 : i32
    %c0_i32_0 = arith.constant 0 : i32
    return %arg0, %c0_i32, %arg1 : i32, i32, i32
  }
}

</mosaic_0001>

<bundles_post_ra>
// kernel: tpu_custom_call.1
= control target key start
LH: loop header
LB: loop body
LE: loop exit
PB: predicated region body
PF: predicated region fallthrough
CT: control target
= control target key end

     0   :  { %s1524_s0 = inlined_call_operand.hbm [shape: f32[2,4,256], index: 0, kind: input, shape index: {}]   ;;  %s1525_s1 = inlined_call_operand.hbm [shape: f32[2,4,256], index: 1, kind: input, shape index: {}]   ;;  %s1526_s2 = inlined_call_operand.hbm [shape: f32[2,4,256], index: 2, kind: input, shape index: {}]   ;;  %s1527_s3 = inlined_call_operand.hbm [shape: f32[2,4,256], index: 3, kind: output, shape index: {}]  }
   0x1   :  { %1533 = sst [smem:[#allocation15_spill]] %s1525_s1 }
   0x2   :  { %8 = vsyncpa [#allocation3], 0 }
   0x3   :  { %10 = vsyncpa [#allocation3 + $0x1], 0 }
   0x4   :  { %11 = vsyncpa [#allocation6], 0 }
   0x5   :  { %13 = vsyncpa [#allocation6 + $0x1], 0 }
   0x6   :  { %14 = vsyncpa [#allocation4], 0 }
   0x7   :  { %16 = vsyncpa [#allocation4 + $0x1], 0  ;;  %s1149_s12 = smov 0   ;;  %s1151_s13 = smov 0  }
   0x8   :  { %s1153_s14 = smov 0   ;;  %s1155_s15 = smov 0  }
   0x9   :  { %s1157_s16 = smov 0   ;;  %s1159_s17 = smov 0  }
   0xa LB: > { %1534 = sst [smem:[#allocation12_spill]] %s1118_s16  ;;  %s1180_s18 = sadd.s32 4294967295, %s1122_s17   ;;  %s1122_s17 = sphi %s1159_s17, %s22_s17   ;;  %s1118_s16 = sphi %s1157_s16, %s1555_s16   ;;  %s1114_s15 = sphi %s1155_s15, %s1554_s15   ;;  %s1110_s14 = sphi %s1153_s14, %s1558_s14   ;;  %s1106_s13 = sphi %s1151_s13, %s1557_s13   ;;  %s1102_s12 = sphi %s1149_s12, %s1556_s12  }
   0xb   : > { %s828_s19 = sadd.s32 4294967294, %s1122_s17   ;;  %s34_s20 = sadd.s32 1, %s1118_s16 }
   0xc   : > { %s43_s21 = sadd.s32 1, %s1110_s14  ;;  %p36_p0 = scmp.ge.s32.totalorder %s34_s20, 2 }
   0xd   : > { %p50_p1 = scmp.ne.s32.totalorder %s1110_s14, %s1106_s13  ;;  %p51_p2 = scmp.eq.s32.totalorder %s1122_s17, 0 }
   0xe   : > { %p56_p3 = scmp.ne.s32.totalorder %s1106_s13, %s1102_s12  ;;  %s1560_s20 = smov (%p36_p0, %s34_s20), 0 }
   0xf   : > { %1535 = sst [smem:[#allocation13_spill]] %s1560_s20  ;;  %p1192_p4 = por %p51_p2, %p50_p1 }
  0x10   : > { %p57_p5 = scmp.eq.s32.totalorder %s1180_s18, 0  ;;  %s38_s23 = ssub.s32 %s1118_s16, %s1560_s20 }
  0x11   : > { %p138_p6 = scmp.eq.s32.totalorder %s1180_s18, 1  ;;  %p41_p7 = scmp.eq.s32.totalorder %s38_s23, 0 }
  0x12   : > { %p1200_p8 = por %p57_p5, %p56_p3  ;;  %p144_p10 = scmp.eq.s32.totalorder %s828_s19, 1 }
  0x13   : > { %p1204_p9 = por %p138_p6, %p50_p1  ;;  %p876_p13 = scmp.lt.s32.totalorder %s1122_s17, 2 }
  0x14   : > { %s1537_s24 = scalar_select %p1200_p8, 1, 0 }
  0x15   : > { %s1538_s25 = scalar_select %p1204_p9, 1, 0 }
  0x16   : > { %s1209_s26 = scalar_select %p41_p7, %s1110_s14, %s43_s21  }
  0x17   : > { %p1211_p11 = por %p144_p10, %p56_p3  ;;  %s164_s28 = sand.u32 1, %s1110_s14  }
  0x18   : > { %1539 = sst [smem:[#allocation14_spill]] %s1209_s26  ;;  %s1220_s29 = sshll.u32 %s164_s28, 3 }
  0x19   : > { %s1540_s27 = scalar_select %p1211_p11, 1, 0 }
  0x1a   : > { %s1223_s30 = sshll.u32 %s1118_s16, 7  ;;  %p1227_p0 = pnand %p876_p13, %p1192_p4 }
  0x1b   : > { %s185_s5 = sand.u32 1, %s1122_s17   ;;  %s1542_s1 = sld [smem:[#allocation15_spill]] }
  0x1c   : > { %s1541_s4 = scalar_select %p1227_p0, 1, 0 }
  0x1d   : > { %s189_s9 = scalar_lea.vmem [#allocation5], %s1220_s29  ;;  %s1243_s11 = scalar_lea.sflag [#allocation6], %s185_s5 }
  0x1e   : > { %s199_s10 = sshll.u32 %s189_s9, 4  ;;  %p1249_p4 = pneg %p1227_p0  ;;  %s1240_s10 = int_to_ptr.vmem [resolvable:$true] %s199_s10 }
  0x21   : > { %s1236_s8 = scalar_lea.hbm %s1542_s1, %s1223_s30  ;;  %s951_s6 = scalar_lea.hbm %s1542_s1, 256 }
  0x22   : > { %s946_s19 = scalar_lea.hbm %s1236_s8, 128  ;;  %p952_p7 = scmp.lt.u32.totalorder %s1236_s8, %s1542_s1 }
  0x23   : > { %p947_p3 = scmp.ne.s32.totalorder %s1236_s8, %s946_s19  ;;  %p953_p10 = scmp.lt.u32.totalorder %s951_s6, %s946_s19 }
  0x24   : > { %p955_p12 = scmp.lt.u32.totalorder %s946_s19, %s1236_s8 }
  0x25   : > { %p949_p5 = pnand %p1249_p4, %p947_p3  ;;  %p954_p13 = por %p953_p10, %p952_p7 }
  0x27   : > { %p950_p6 = pneg %p949_p5  ;;  %p956_p1 = por %p955_p12, %p954_p13 }
  0x29   : > { %p957_p2 = pnand %p956_p1, %p950_p6 }
  0x2b   : > { %960 = shalt.err (!%p957_p2)
}
  0x2c   : > { %s961_s5 = scalar_lea.vmem %s1240_s10, 128  ;;  %s1124_s22 = smov [#allocation5]  }
  0x2d   : > { %p962_p3 = scmp.ne.s32.totalorder %s1240_s10, %s961_s5  ;;  %s966_s23 = sshll.u32 %s1124_s22, 4  ;;  %s967_s23 = int_to_ptr.vmem [resolvable:$false] %s966_s23 }
  0x2e   : > { %s968_s7 = scalar_lea.vmem %s967_s23, 256  ;;  %p969_p9 = scmp.lt.s32.totalorder %s1240_s10, %s967_s23 }
  0x2f   : > { %p964_p5 = pnand %p962_p3, %p1249_p4  ;;  %p970_p8 = scmp.lt.s32.totalorder %s968_s7, %s961_s5 }
  0x31   : > { %p965_p11 = pneg %p964_p5  ;;  %p971_p7 = por %p970_p8, %p969_p9 }
  0x33   : > { %p972_p10 = pnand %p971_p7, %p965_p11 }
  0x35   : > { %975 = shalt.err (!%p972_p10)
}
  0x36   : > { %868 = dma.hbm_to_vmem [thread:$0]  (!%p1227_p0), %s1236_s8, 128, %s1240_s10, %s1243_s11  }
  0x37   : > { %p1544_p12 = scmp.lt.s32.totalorder %s1122_s17, 3  ;;  %p1545_p1 = scmp.ge.s32.totalorder %s1122_s17, 1 }
  0x38   : > { %s1285_s5 = scalar_lea.hbm %s1524_s0, %s1223_s30  ;;  %s168_s22 = scalar_lea.vmem [#allocation2], %s1220_s29 }
  0x39   : > { %p1277_p2 = pnand %p1545_p1, %p1544_p12  ;;  %s178_s23 = sshll.u32 %s168_s22, 4  ;;  %s1288_s23 = int_to_ptr.vmem [resolvable:$true] %s178_s23 }
  0x3a   : > { %s1294_s7 = scalar_lea.hbm %s1526_s2, %s1223_s30  ;;  %s165_s1 = scalar_lea.sflag [#allocation3], %s164_s28 }
  0x3b   : > { %s1546_s19 = scalar_select %p1277_p2, 1, 0 }
  0x3c   : > { %s976_s20 = scalar_lea.hbm %s1285_s5, 128  ;;  %s981_s16 = scalar_lea.hbm %s1524_s0, 256 }
  0x3d   : > { %p977_p8 = scmp.ne.s32.totalorder %s1285_s5, %s976_s20  ;;  %p982_p6 = scmp.lt.u32.totalorder %s1285_s5, %s1524_s0 }
  0x3e   : > { %p983_p13 = scmp.lt.u32.totalorder %s981_s16, %s976_s20  ;;  %p985_p5 = scmp.lt.u32.totalorder %s976_s20, %s1285_s5 }
  0x3f   : > { %p979_p9 = pnand %p977_p8, %p1249_p4 }
  0x40   : > { %p984_p3 = por %p983_p13, %p982_p6 }
  0x41   : > { %p980_p11 = pneg %p979_p9 }
  0x42   : > { %p986_p7 = por %p985_p5, %p984_p3 }
  0x44   : > { %p987_p10 = pnand %p986_p7, %p980_p11 }
  0x46   : > { %990 = shalt.err (!%p987_p10)
}
  0x47   : > { %s991_s28 = scalar_lea.vmem %s1288_s23, 128  ;;  %s1125_s30 = smov [#allocation2]  }
  0x48   : > { %p992_p12 = scmp.ne.s32.totalorder %s1288_s23, %s991_s28  ;;  %s996_s8 = sshll.u32 %s1125_s30, 4  ;;  %s997_s8 = int_to_ptr.vmem [resolvable:$false] %s996_s8 }
  0x49   : > { %s998_s26 = scalar_lea.vmem %s997_s8, 256  ;;  %p999_p9 = scmp.lt.s32.totalorder %s1288_s23, %s997_s8 }
  0x4a   : > { %p994_p1 = pnand %p992_p12, %p1249_p4  ;;  %p1000_p2 = scmp.lt.s32.totalorder %s998_s26, %s991_s28 }
  0x4c   : > { %p995_p8 = pneg %p994_p1  ;;  %p1001_p6 = por %p1000_p2, %p999_p9 }
  0x4e   : > { %p1002_p13 = pnand %p1001_p6, %p995_p8 }
  0x50   : > { %1005 = shalt.err (!%p1002_p13)
}
  0x51   : > { %865 = dma.hbm_to_vmem [thread:$0]  (!%p1227_p0), %s1285_s5, 128, %s1288_s23, %s165_s1  }
  0x52   : > { %s210_s16 = scalar_lea.vmem [#allocation7], %s1220_s29  ;;  %s1006_s10 = scalar_lea.hbm %s1294_s7, 128 }
  0x53   : > { %s220_s20 = sshll.u32 %s210_s16, 4  ;;  %p1007_p11 = scmp.ne.s32.totalorder %s1294_s7, %s1006_s10  ;;  %s221_s20 = int_to_ptr.vmem [resolvable:$true] %s220_s20 }
  0x54   : > { %s1011_s22 = scalar_lea.hbm %s1526_s2, 256  ;;  %p1012_p5 = scmp.lt.u32.totalorder %s1294_s7, %s1526_s2 }
  0x55   : > { %p1009_p2 = pnand %p1007_p11, %p1249_p4  ;;  %p1013_p7 = scmp.lt.u32.totalorder %s1011_s22, %s1006_s10 }
  0x56   : > { %p1015_p12 = scmp.lt.u32.totalorder %s1006_s10, %s1294_s7 }
  0x57   : > { %p1010_p3 = pneg %p1009_p2  ;;  %p1014_p10 = por %p1013_p7, %p1012_p5 }
  0x59   : > { %p1016_p1 = por %p1015_p12, %p1014_p10 }
  0x5b   : > { %p1017_p8 = pnand %p1016_p1, %p1010_p3 }
  0x5d   : > { %1020 = shalt.err (!%p1017_p8)
}
  0x5e   : > { %s1021_s1 = scalar_lea.vmem %s221_s20, 128  ;;  %s1126_s29 = smov [#allocation7]  }
  0x5f   : > { %p1022_p9 = scmp.ne.s32.totalorder %s221_s20, %s1021_s1  ;;  %s1026_s5 = sshll.u32 %s1126_s29, 4  ;;  %s1027_s5 = int_to_ptr.vmem [resolvable:$false] %s1026_s5 }
  0x60   : > { %s1028_s23 = scalar_lea.vmem %s1027_s5, 256  ;;  %p1029_p11 = scmp.lt.s32.totalorder %s221_s20, %s1027_s5 }
  0x61   : > { %p1024_p6 = pnand %p1022_p9, %p1249_p4  ;;  %p1030_p2 = scmp.lt.s32.totalorder %s1028_s23, %s1021_s1 }
  0x63   : > { %p1025_p13 = pneg %p1024_p6  ;;  %p1031_p0 = por %p1030_p2, %p1029_p11 }
  0x65   : > { %p1032_p5 = pnand %p1031_p0, %p1025_p13 }
  0x67   : > { %1035 = shalt.err (!%p1032_p5)
}
  0x68   : > { %p1547_p7 = scmp.ne.s32.totalorder %s1541_s4, 0  ;;  %p1548_p3 = scmp.ne.s32.totalorder %s1546_s19, 0 }
  0x69   : > { %s1341_s21 = sand.u32 (!%p1548_p3), 1, %s1106_s13   ;;  %p1549_p0 = scmp.ne.s32.totalorder (!%p1548_p3), %s1537_s24, 0 }
  0x6a   : > { %871 = dma.hbm_to_vmem [thread:$0]  (!%p1547_p7), %s1294_s7, 128, %s221_s20, %s1243_s11  }
  0x6b   : > { %229 = sbr.rel (%p1548_p3) target bundleno = 237 (0xed), region = 32  ;;  %s1344_s8 = sshll.u32 (!%p1548_p3), %s1341_s21, 3 }
  0x6c   : > { %s232_s26 = scalar_lea.sflag (!%p1548_p3), [#allocation3], %s1341_s21  ;;  %s235_s16 = scalar_lea.vmem (!%p1548_p3), [#allocation2], %s1344_s8 }
  0x72   : > { %1089 = dma.done.wait (%p1549_p0), %s232_s26, 128  }
  0x73   : > { %1091 = vsyncadd (%p1549_p0), %s232_s26, 4294967168  ;;  %s240_s4 = sand.u32 1, %s1180_s18   ;;  %s244_s19 = scalar_lea.vmem [#allocation5], %s1344_s8 }
  0x74   : > { %s241_s11 = scalar_lea.sflag [#allocation6], %s240_s4 }
  0x75   : > { %1093 = dma.done.wait (%p1549_p0), %s241_s11, 256  }
  0x76   : > { %1095 = vsyncadd (%p1549_p0), %s241_s11, 4294967040  ;;  %v1127_v0 = vmov 1966171168   ;;  %v341_v2 = vlaneseq  ;;  %vm296_vm0 = vcmask 1043456   ;;  %s253_s7 = scalar_lea.vmem [#allocation7], %s1344_s8  ;;  %v291_v14 = vld [vmem:[%s244_s19] sm:$0xff] }
  0x77   : > { %v339_v1 = vunpack.c.l.s4 %v1127_v0  ;;  %v1359_v5 = vld [vmem:[%s253_s7] sm:$0xff]  ;;  %vm325_vm1 = vcmp.ge.f32.partialorder %v291_v14, 0.0  ;;  %vm568_vm2 = vcmask 1041409   ;;  %vm570_vm3 = vcmask 1045509   ;;  %s853_s18 = sshll.u32 %s1114_s15, 7  ;;  %s285_s24 = scalar_lea.vmem [#allocation8], %s1344_s8 }
  0x78   : > { %v342_v4 = vshrl.u32 %v341_v2, 7  ;;  %v1363_v6 = vcombine.high %v1359_v5, %v1359_v5  ;;  %v297_v7 = vsel %vm296_vm0, %v1359_v5, -inf  ;;  %v311_v8 = vsel %vm296_vm0, %v1359_v5, inf  ;;  %s694_s20 = sshll.u32 %s285_s24, 4  ;;  %s1475_s9 = scalar_lea.hbm %s1527_s3, %s853_s18  ;;  %s1477_s20 = int_to_ptr.vmem [resolvable:$true] %s694_s20 }
  0x79   : > { %v340_v3 = vunpack.c.0.s8 %v339_v1  ;;  %v298_v9 = vrot.slane %v297_v7, 4  ;;  %v312_v10 = vrot.slane %v311_v8, 4  ;;  %vm573_vm4 = vcmask 1042434   ;;  %s678_s22 = scalar_lea.sflag [#allocation4], %s1341_s21  ;;  %s1036_s28 = scalar_lea.vmem %s1477_s20, 128 }
  0x7a   : > { %v304_v11 = vsel %vm296_vm0, %v1363_v6, -inf  ;;  %v318_v12 = vsel %vm296_vm0, %v1363_v6, inf  ;;  %v1377_v40 = vsub.s32 0, %v342_v4  ;;  %v1380_v44 = vsub.s32 1, %v342_v4  ;;  %p1037_p4 = scmp.ne.s32.totalorder %s1477_s20, %s1036_s28  ;;  %p1550_p10 = scmp.ne.s32.totalorder %s1538_s25, 0 }
  0x7b   : > { %v1373_v13 = vsub.s32 %v340_v3, %v342_v4  ;;  %v299_v15 = vmax.f32 %v297_v7, %v298_v9  ;;  %v305_v16 = vrot.slane %v304_v11, 4  ;;  %v313_v17 = vmin.f32 %v311_v8, %v312_v10  ;;  %s1128_s15 = smov [#allocation8]  }
  0x7c   : > { %v319_v18 = vrot.slane %v318_v12, 4  ;;  %vm575_vm5 = vcmask 1046534   ;;  %vm578_vm6 = vcmask 1043459   ;;  %vm580_vm7 = vcmask 1047559   ;;  %p1038_p12 = pnand %p1037_p4, %p1550_p10  ;;  %s1040_s30 = sshll.u32 %s1128_s15, 4  ;;  %s1041_s30 = int_to_ptr.vmem [resolvable:$false] %s1040_s30 }
  0x7d   : > { %v300_v19 = vrot.slane %v299_v15, 2  ;;  %v306_v20 = vmax.f32 %v304_v11, %v305_v16  ;;  %v314_v21 = vrot.slane %v313_v17, 2  ;;  %v344_v23 = vrot.slane %v291_v14, %v1373_v13  ;;  %s1042_s1 = scalar_lea.vmem %s1041_s30, 256  ;;  %p1043_p8 = scmp.lt.s32.totalorder %s1477_s20, %s1041_s30 }
  0x7e   : > { %v320_v22 = vmin.f32 %v318_v12, %v319_v18  ;;  %p1039_p1 = pneg %p1038_p12  ;;  %p1044_p9 = scmp.lt.s32.totalorder %s1042_s1, %s1036_s28 }
  0x7f   : > { %v301_v24 = vmax.f32 %v299_v15, %v300_v19  ;;  %v307_v25 = vrot.slane %v306_v20, 2  ;;  %v315_v26 = vmin.f32 %v313_v17, %v314_v21  ;;  %v345_v32 = vcombine.high %v344_v23, %v344_v23 }
  0x80   : > { %v321_v27 = vrot.slane %v320_v22, 2  ;;  %v352_v39 = vrot.slane %v344_v23, %v1373_v13  ;;  %p1045_p6 = por %p1044_p9, %p1043_p8 }
  0x81   : > { %v302_v28 = vrot.slane %v301_v24, 1  ;;  %v308_v29 = vmax.f32 %v306_v20, %v307_v25  ;;  %v316_v30 = vrot.slane %v315_v26, 1  ;;  %v359_v43 = vrot.slane %v345_v32, %v1373_v13 }
  0x82   : > { %v322_v31 = vmin.f32 %v320_v22, %v321_v27  ;;  %v360_v47 = vcombine.high %v352_v39, %v352_v39  ;;  %v365_v49 = vrot.slane %v352_v39, %v1377_v40  ;;  %v369_v51 = vrot.slane %v352_v39, %v1380_v44  ;;  %p1046_p13 = pnand %p1045_p6, %p1039_p1 }
  0x83   : > { %v303_v33 = vmax.f32 %v301_v24, %v302_v28  ;;  %v309_v34 = vrot.slane %v308_v29, 1  ;;  %v317_v35 = vmin.f32 %v315_v26, %v316_v30  ;;  %v361_v48 = vcombine.high %v359_v43, %v359_v43 }
  0x84   : > { %v323_v36 = vrot.slane %v322_v31, 1  ;;  %v373_v52 = vrot.slane %v359_v43, %v1377_v40  ;;  %v377_v53 = vrot.slane %v359_v43, %v1380_v44  ;;  %v381_v55 = vrot.slane %v360_v47, %v1377_v40 }
  0x85   : > { %v310_v37 = vmax.f32 %v308_v29, %v309_v34  ;;  %v385_v56 = vrot.slane %v360_v47, %v1380_v44  ;;  %v389_v57 = vrot.slane %v361_v48, %v1377_v40  ;;  %v393_v58 = vrot.slane %v361_v48, %v1380_v44 }
  0x86   : > { %v324_v38 = vmin.f32 %v322_v31, %v323_v36  ;;  %v402_v61 = vmul.f32 %v365_v49, %v1359_v5  ;;  %v403_v62 = vmul.f32 %v369_v51, %v1363_v6  ;;  %v404_v63 = vmul.f32 %v373_v52, %v1359_v5 }
  0x87   : > { %v328_v41 = vcombine.low %v303_v33, %v310_v37  ;;  %v405_v0 = vmul.f32 %v377_v53, %v1363_v6  ;;  %v406_v7 = vmul.f32 %v381_v55, %v1359_v5  ;;  %v407_v8 = vmul.f32 %v385_v56, %v1363_v6 }
  0x88   : > { %v333_v42 = vcombine.low %v317_v35, %v324_v38  ;;  %v408_v9 = vmul.f32 %v389_v57, %v1359_v5  ;;  %v409_v10 = vmul.f32 %v393_v58, %v1363_v6 }
  0x89   : > { %v330_v45 = vmul.f32 %v328_v41, %v291_v14 }
  0x8a   : > { %v335_v46 = vmul.f32 %v333_v42, %v291_v14 }
  0x8c   : > { %v336_v50 = vsel %vm325_vm1, %v330_v45, %v335_v46 }
  0x8d   : > { %v417_v54 = vrot.slane %v336_v50, %v1373_v13 }
  0x8f   : > { %v418_v59 = vcombine.high %v417_v54, %v417_v54  ;;  %v425_v60 = vrot.slane %v417_v54, %v1373_v13 }
  0x91   : > { %v432_v1 = vrot.slane %v418_v59, %v1373_v13  ;;  %v433_v2 = vcombine.high %v425_v60, %v425_v60  ;;  %v438_v3 = vrot.slane %v425_v60, %v1377_v40  ;;  %v442_v4 = vrot.slane %v425_v60, %v1380_v44 }
  0x93   : > { %v434_v11 = vcombine.high %v432_v1, %v432_v1  ;;  %v446_v12 = vrot.slane %v432_v1, %v1377_v40  ;;  %v450_v14 = vrot.slane %v432_v1, %v1380_v44  ;;  %v454_v15 = vrot.slane %v433_v2, %v1377_v40 }
  0x94   : > { %v458_v16 = vrot.slane %v433_v2, %v1380_v44  ;;  %v475_v17 = vsub.f32 %v402_v61, %v438_v3  ;;  %v476_v18 = vsub.f32 %v403_v62, %v442_v4 }
  0x95   : > { %v462_v19 = vrot.slane %v434_v11, %v1377_v40  ;;  %v466_v20 = vrot.slane %v434_v11, %v1380_v44  ;;  %v477_v21 = vsub.f32 %v404_v63, %v446_v12  ;;  %v478_v22 = vsub.f32 %v405_v0, %v450_v14 }
  0x96   : > { %v479_v5 = vsub.f32 %v406_v7, %v454_v15  ;;  %v480_v23 = vsub.f32 %v407_v8, %v458_v16  ;;  %v483_v6 = vmul.f32 1.442695, %v475_v17  ;;  %v485_v24 = vmul.f32 1.442695, %v476_v18 }
  0x97   : > { %v481_v25 = vsub.f32 %v408_v9, %v462_v19  ;;  %v482_v26 = vsub.f32 %v409_v10, %v466_v20  ;;  %v487_v27 = vmul.f32 1.442695, %v477_v21  ;;  %v489_v28 = vmul.f32 1.442695, %v478_v22 }
  0x98   : > { %928 = vpow2.f32 %v483_v6  ;;  %v491_v29 = vmul.f32 1.442695, %v479_v5  ;;  %v493_v30 = vmul.f32 1.442695, %v480_v23 }
  0x99   : > { %930 = vpow2.f32 %v485_v24  ;;  %v495_v31 = vmul.f32 1.442695, %v481_v25  ;;  %v497_v32 = vmul.f32 1.442695, %v482_v26 }
  0x9a   : > { %932 = vpow2.f32 %v487_v27 }
  0x9b   : > { %934 = vpow2.f32 %v489_v28 }
  0x9c   : > { %936 = vpow2.f32 %v491_v29 }
  0x9d   : > { %938 = vpow2.f32 %v493_v30 }
  0x9e   : > { %940 = vpow2.f32 %v495_v31 }
  0x9f   : > { %942 = vpow2.f32 %v497_v32 }
  0xa2   : > { %v1409_v33 = vpop.eup %928 }
  0xa3   : > { %v1411_v34 = vpop.eup %930  ;;  %v499_v35 = vsel %vm296_vm0, %v1409_v33, 0.0 }
  0xa4   : > { %v1415_v36 = vpop.eup %932  ;;  %v500_v37 = vrot.slane %v499_v35, 4  ;;  %v506_v38 = vsel %vm296_vm0, %v1411_v34, 0.0 }
  0xa5   : > { %v1419_v39 = vpop.eup %934  ;;  %v507_v41 = vrot.slane %v506_v38, 4  ;;  %v513_v42 = vsel %vm296_vm0, %v1415_v36, 0.0 }
  0xa6   : > { %v1423_v43 = vpop.eup %936  ;;  %v501_v45 = vadd.f32 %v500_v37, %v499_v35  ;;  %v514_v46 = vrot.slane %v513_v42, 4  ;;  %v520_v47 = vsel %vm296_vm0, %v1419_v39, 0.0 }
  0xa7   : > { %v1427_v48 = vpop.eup %938  ;;  %v508_v49 = vadd.f32 %v507_v41, %v506_v38  ;;  %v521_v50 = vrot.slane %v520_v47, 4  ;;  %v527_v51 = vsel %vm296_vm0, %v1423_v43, 0.0 }
  0xa8   : > { %v1431_v52 = vpop.eup %940  ;;  %v502_v53 = vrot.slane %v501_v45, 2  ;;  %v515_v54 = vadd.f32 %v514_v46, %v513_v42  ;;  %v528_v55 = vrot.slane %v527_v51, 4  ;;  %v534_v56 = vsel %vm296_vm0, %v1427_v48, 0.0 }
  0xa9   : > { %v1435_v57 = vpop.eup %942  ;;  %v509_v58 = vrot.slane %v508_v49, 2  ;;  %v522_v59 = vadd.f32 %v521_v50, %v520_v47  ;;  %v535_v60 = vrot.slane %v534_v56, 4  ;;  %v541_v61 = vsel %vm296_vm0, %v1431_v52, 0.0 }
  0xaa   : > { %v503_v62 = vadd.f32 %v502_v53, %v501_v45  ;;  %v516_v63 = vrot.slane %v515_v54, 2  ;;  %v529_v0 = vadd.f32 %v528_v55, %v527_v51  ;;  %v542_v1 = vrot.slane %v541_v61, 4 }
  0xab   : > { %v510_v2 = vadd.f32 %v509_v58, %v508_v49  ;;  %v523_v3 = vrot.slane %v522_v59, 2  ;;  %v536_v4 = vadd.f32 %v535_v60, %v534_v56  ;;  %v548_v7 = vsel %vm296_vm0, %v1435_v57, 0.0 }
  0xac   : > { %v504_v8 = vrot.slane %v503_v62, 1  ;;  %v517_v9 = vadd.f32 %v516_v63, %v515_v54  ;;  %v530_v10 = vrot.slane %v529_v0, 2  ;;  %v543_v11 = vadd.f32 %v542_v1, %v541_v61 }
  0xad   : > { %v511_v12 = vrot.slane %v510_v2, 1  ;;  %v524_v14 = vadd.f32 %v523_v3, %v522_v59  ;;  %v537_v15 = vrot.slane %v536_v4, 2  ;;  %v549_v16 = vrot.slane %v548_v7, 4  ;;  %v290_v59 = vld [vmem:[%s235_s16] sm:$0xff] }
  0xae   : > { %v505_v17 = vadd.f32 %v504_v8, %v503_v62  ;;  %v518_v18 = vrot.slane %v517_v9, 1  ;;  %v531_v19 = vadd.f32 %v530_v10, %v529_v0  ;;  %v544_v20 = vrot.slane %v543_v11, 2 }
  0xaf   : > { %v512_v21 = vadd.f32 %v511_v12, %v510_v2  ;;  %v525_v22 = vrot.slane %v524_v14, 1  ;;  %v538_v5 = vadd.f32 %v537_v15, %v536_v4  ;;  %v550_v23 = vadd.f32 %v549_v16, %v548_v7 }
  0xb0   : > { %v519_v6 = vadd.f32 %v518_v18, %v517_v9  ;;  %v532_v24 = vrot.slane %v531_v19, 1  ;;  %v545_v25 = vadd.f32 %v544_v20, %v543_v11 }
  0xb1   : > { %v526_v26 = vadd.f32 %v525_v22, %v524_v14  ;;  %v539_v27 = vrot.slane %v538_v5, 1  ;;  %v551_v28 = vrot.slane %v550_v23, 2  ;;  %v563_v35 = vcombine.low %v505_v17, %v512_v21 }
  0xb2   : > { %v533_v29 = vadd.f32 %v532_v24, %v531_v19  ;;  %v546_v30 = vrot.slane %v545_v25, 1 }
  0xb3   : > { %v540_v31 = vadd.f32 %v539_v27, %v538_v5  ;;  %v552_v32 = vadd.f32 %v551_v28, %v550_v23  ;;  %v564_v37 = vcombine.low %v519_v6, %v526_v26 }
  0xb4   : > { %v547_v38 = vadd.f32 %v546_v30, %v545_v25 }
  0xb5   : > { %v553_v41 = vrot.slane %v552_v32, 1  ;;  %v565_v42 = vcombine.low %v533_v29, %v540_v31  ;;  %v567_v45 = vrot.slane %v564_v37, 7 }
  0xb7   : > { %v554_v46 = vadd.f32 %v553_v41, %v552_v32  ;;  %v569_v47 = vsel %vm568_vm2, %v567_v45, %v563_v35  ;;  %v572_v49 = vrot.slane %v565_v42, 6 }
  0xb8   : > { %v571_v50 = vsel %vm570_vm3, %v567_v45, %v569_v47 }
  0xb9   : > { %v566_v51 = vcombine.low %v547_v38, %v554_v46  ;;  %v574_v53 = vsel %vm573_vm4, %v572_v49, %v571_v50 }
  0xba   : > { %v576_v54 = vsel %vm575_vm5, %v572_v49, %v574_v53 }
  0xbb   : > { %v577_v55 = vrot.slane %v566_v51, 5 }
  0xbd   : > { %v579_v56 = vsel %vm578_vm6, %v577_v55, %v576_v54 }
  0xbe   : > { %v581_v58 = vsel %vm580_vm7, %v577_v55, %v579_v56 }
  0xbf   : > { %944 = vrcp.f32 %v581_v58 }
  0xc9   : > { %v945_v60 = vpop.eup %944 }
  0xca   : > { %v584_v61 = vmul.f32 %v945_v60, %v290_v59 }
  0xcc   : > { %v592_v62 = vrot.slane %v584_v61, %v1373_v13 }
  0xce   : > { %v593_v63 = vcombine.high %v592_v62, %v592_v62  ;;  %v600_v0 = vrot.slane %v592_v62, %v1373_v13 }
  0xd0   : > { %v607_v1 = vrot.slane %v593_v63, %v1373_v13  ;;  %v608_v2 = vcombine.high %v600_v0, %v600_v0  ;;  %v613_v3 = vrot.slane %v600_v0, %v1377_v40  ;;  %v617_v4 = vrot.slane %v600_v0, %v1380_v44 }
  0xd2   : > { %v609_v7 = vcombine.high %v607_v1, %v607_v1  ;;  %v621_v8 = vrot.slane %v607_v1, %v1377_v40  ;;  %v625_v9 = vrot.slane %v607_v1, %v1380_v44  ;;  %v629_v10 = vrot.slane %v608_v2, %v1377_v40 }
  0xd3   : > { %v633_v11 = vrot.slane %v608_v2, %v1380_v44  ;;  %v650_v12 = vmul.f32 %v1409_v33, %v613_v3  ;;  %v651_v14 = vmul.f32 %v1411_v34, %v617_v4 }
  0xd4   : > { %v637_v13 = vrot.slane %v609_v7, %v1377_v40  ;;  %v641_v15 = vrot.slane %v609_v7, %v1380_v44  ;;  %v652_v16 = vmul.f32 %v1415_v36, %v621_v8  ;;  %v653_v17 = vmul.f32 %v1419_v39, %v625_v9 }
  0xd5   : > { %v654_v18 = vmul.f32 %v1423_v43, %v629_v10  ;;  %v655_v19 = vmul.f32 %v1427_v48, %v633_v11  ;;  %v658_v20 = vsel %vm296_vm0, %v650_v12, 0.0  ;;  %v665_v33 = vsel %vm296_vm0, %v651_v14, 0.0 }
  0xd6   : > { %v656_v34 = vmul.f32 %v1431_v52, %v637_v13  ;;  %v657_v40 = vmul.f32 %v1435_v57, %v641_v15  ;;  %v659_v44 = vsel %vm296_vm0, %v652_v16, 0.0  ;;  %v666_v36 = vsel %vm296_vm0, %v653_v17, 0.0 }
  0xd7   : > { %v660_v21 = vadd.f32 %v659_v44, %v658_v20  ;;  %v661_v39 = vsel %vm296_vm0, %v654_v18, 0.0  ;;  %v667_v43 = vadd.f32 %v666_v36, %v665_v33  ;;  %v668_v48 = vsel %vm296_vm0, %v655_v19, 0.0 }
  0xd8   : > { %v663_v22 = vsel %vm296_vm0, %v656_v34, 0.0  ;;  %v670_v5 = vsel %vm296_vm0, %v657_v40, 0.0 }
  0xd9   : > { %v662_v23 = vadd.f32 %v661_v39, %v660_v21  ;;  %v669_v52 = vadd.f32 %v668_v48, %v667_v43 }
  0xdb   : > { %v664_v57 = vadd.f32 %v663_v22, %v662_v23  ;;  %v671_v6 = vadd.f32 %v670_v5, %v669_v52 }
  0xdd   : > { %v674_v24 = vcombine.low %v664_v57, %v671_v6 }
  0xdf   : > { %676 = vst [vmem:[%s285_s24] sm:$0xff] %v674_v24 }
  0xe0   : > { %1049 = shalt.err (!%p1046_p13)
}
  0xe1   : > { %s1050_s29 = scalar_lea.hbm %s1475_s9, 128  ;;  %s1054_s21 = scalar_lea.hbm %s1527_s3, 256 }
  0xe2   : > { %p1051_p11 = scmp.ne.s32.totalorder %s1475_s9, %s1050_s29  ;;  %p1055_p7 = scmp.lt.u32.totalorder %s1475_s9, %s1527_s3 }
  0xe3   : > { %p1056_p3 = scmp.lt.u32.totalorder %s1054_s21, %s1050_s29  ;;  %p1058_p4 = scmp.lt.u32.totalorder %s1050_s29, %s1475_s9 }
  0xe4   : > { %p1052_p2 = pnand %p1051_p11, %p1550_p10 }
  0xe5   : > { %p1057_p0 = por %p1056_p3, %p1055_p7 }
  0xe6   : > { %p1053_p5 = pneg %p1052_p2 }
  0xe7   : > { %p1059_p12 = por %p1058_p4, %p1057_p0 }
  0xe9   : > { %p1060_p1 = pnand %p1059_p12, %p1053_p5 }
  0xeb   : > { %1063 = shalt.err (!%p1060_p1)
}
  0xec   : > { %860 = dma.vmem_to_hbm [thread:$0]  (%p1550_p10), %s1477_s20, 128, %s1475_s9, %s678_s22  }
  0xed PF: > { %s706_s16 = sand.u32 1, %s1102_s12   ;;  %p1551_p8 = scmp.ne.s32.totalorder %s1540_s27, 0 }
  0xee   : > { %p1552_p9 = scmp.ge.s32.totalorder %s1122_s17, 2  ;;  %s707_s4 = scalar_lea.sflag [#allocation4], %s706_s16 }
  0xf0   : > { %p873_p6 = pnand %p1552_p9, %p1551_p8 }
  0xf2   : > { %1097 = dma.done.wait (!%p873_p6), %s707_s4, 128  }
  0xf3   : > { %1099 = vsyncadd (!%p873_p6), %s707_s4, 4294967168  ;;  %s22_s17 = sadd.s32 1, %s1122_s17   ;;  %s1553_s25 = sld [smem:[#allocation14_spill]] }
  0xf4   : > { %p19_p13 = scmp.ge.s32.totalorder %s22_s17, 4   ;;  %s1554_s15 = sld [smem:[#allocation12_spill]] }
  0xf5   : > { %s1555_s16 = sld [smem:[#allocation13_spill]]  ;;  %s1556_s12 = smov %s1106_s13 }
  0xf6   : > { %s1557_s13 = smov %s1110_s14  ;;  %21 = sbr.rel (!%p19_p13) target bundleno = 10 (0xa), region = 101 }
  0xf9   : > { %s1558_s14 = smov %s1553_s25 }
  0xfd   :  { %712 = vsyncpa [#allocation3], 1 }
  0xfe   :  { %714 = vsyncpa [#allocation3 + $0x1], 1 }
  0xff   :  { %715 = vsyncpa [#allocation6], 1 }
 0x100   :  { %717 = vsyncpa [#allocation6 + $0x1], 1 }
 0x101   :  { %718 = vsyncpa [#allocation4], 1 }
 0x102   :  { %720 = vsyncpa [#allocation4 + $0x1], 1 }

</bundles_post_ra>
